<compile_context>
chip_gen: v7x
topology: tpu7x:2x2x1
jax: 0.10.0
libtpu: 0.0.40
codegen_flags: <defaults>
</compile_context>

<pallas_src>
import jax
import jax.numpy as jnp
from jax.experimental import pallas as pl
from jax.experimental.pallas import tpu as pltpu


def _conv_matmul_kernel(p_ref, w_ref, o_ref):
    """One (batch, M-tile) grid step of the convolution.

    p_ref: (1, Kp, TM)  im2col patches for this tile (last row = ones, for bias)
    w_ref: (OC, Kp)     flattened conv weights, last column = bias
    o_ref: (1, OC, TM)  lane-dense output tile (TM is a multiple of 128)
    """
    o_ref[0] = jnp.dot(
        w_ref[...], p_ref[0], preferred_element_type=jnp.float32
    ).astype(o_ref.dtype)


def _pick_m_tile(m_pad, batch, oc, max_bytes=2 << 20):
    """Largest TM that is a multiple of 128, divides m_pad, and keeps the f32
    output tile under `max_bytes`.  Bigger tiles amortize the ~0.35 us/step
    grid overhead; on v7x we also make sure there are >= 2 parallel steps so
    both TensorCores get work."""
    max_tm = max(128, (max_bytes // (oc * 4)) // 128 * 128)
    best = None
    t = 128
    while t <= min(m_pad, max_tm):
        if m_pad % t == 0:
            best = t
        t += 128
    if best is None:
        best = m_pad                       # tiny / non-128-divisible fallback
    if batch * (m_pad // best) < 2 and best % 256 == 0:
        best //= 2                         # keep both v7x cores busy
    return best


def base_cnn_forward(x_nchw, weight_oihw, bias, padding=(1, 1),
                     compute_dtype=None):
    """Pallas equivalent of BaseCNN().forward(x) with the default config.

    x_nchw:      (B, C, H, W)      float32
    weight_oihw: (OC, C, KH, KW)   float32 (PyTorch Conv2d weight layout)
    bias:        (OC,)             float32
    returns:     (B, OC, OH, OW)   float32 (stride=1 'same' padding)
    """
    B, C, H, W = x_nchw.shape
    OC, IC, KH, KW = weight_oihw.shape
    assert IC == C
    ph, pw = padding
    OH = H + 2 * ph - KH + 1
    OW = W + 2 * pw - KW + 1
    M = OH * OW
    if compute_dtype is None:
        compute_dtype = x_nchw.dtype    # f32 default; bf16 is fast on v6e/v7x.

    # ---- XLA-side layout plumbing: im2col patches + augmented weights. ----
    # K index ordering is (c, kh, kw) for both, so the flattenings match.
    x_pad = jnp.pad(x_nchw, ((0, 0), (0, 0), (ph, ph), (pw, pw)))
    x_pad = x_pad.astype(compute_dtype)
    taps = [x_pad[:, :, kh:kh + OH, kw:kw + OW]
            for kh in range(KH) for kw in range(KW)]
    patches = jnp.stack(taps, axis=2).reshape(B, C * KH * KW, M)

    # Fold the bias into the contraction: ones row / bias column (K -> K+1).
    patches = jnp.concatenate(
        [patches, jnp.ones((B, 1, M), compute_dtype)], axis=1)
    w_aug = jnp.concatenate(
        [weight_oihw.reshape(OC, C * KH * KW).astype(compute_dtype),
         bias.reshape(OC, 1).astype(compute_dtype)], axis=1)
    Kp = C * KH * KW + 1

    # Lane-dense M axis: pad up to a multiple of 128 if needed (no-op here).
    M_pad = -(-M // 128) * 128
    if M_pad != M:
        patches = jnp.pad(patches, ((0, 0), (0, 0), (0, M_pad - M)))

    TM = _pick_m_tile(M_pad, B, OC)
    num_m = M_pad // TM

    out = pl.pallas_call(
        _conv_matmul_kernel,
        out_shape=jax.ShapeDtypeStruct((B, OC, M_pad), jnp.float32),
        grid=(B, num_m),
        in_specs=[
            # im2col patches for the current (batch, M-tile).
            pl.BlockSpec((1, Kp, TM), lambda b, m: (b, 0, m)),
            # Augmented weights: constant block, DMA'd once, VMEM-resident.
            pl.BlockSpec((OC, Kp), lambda b, m: (0, 0)),
        ],
        out_specs=pl.BlockSpec((1, OC, TM), lambda b, m: (b, 0, m)),
        compiler_params=pltpu.CompilerParams(
            # Independent tiles -> shard across v7x's 2 TCs (no-op on v5e/v6e).
            dimension_semantics=("parallel", "parallel"),
            # Blocks are tiny (<= a few MiB double-buffered); 32 MiB is safe on
            # every generation, including v7x's 64 MiB VMEM.
            vmem_limit_bytes=32 * 1024 * 1024,
        ),
    )(patches, w_aug)

    # Output is already channel-major: pure reshape back to NCHW, no transpose.
    return out[:, :, :M].reshape(B, OC, OH, OW)


if __name__ == "__main__":
    key = jax.random.PRNGKey(0)
    k_x, k_w, k_b = jax.random.split(key, 3)

    # Small shapes consistent with BaseCNN defaults: in_channels=3, out_channels=64.
    B, C, H, W = 2, 3, 16, 16
    OC, KH, KW = 64, 3, 3

    x = jax.random.normal(k_x, (B, C, H, W), dtype=jnp.float32)
    weight = jax.random.normal(k_w, (OC, C, KH, KW), dtype=jnp.float32) * 0.1
    bias = jax.random.normal(k_b, (OC,), dtype=jnp.float32) * 0.1

    out = base_cnn_forward(x, weight, bias)
    out = jax.block_until_ready(out)

    # Sanity check vs XLA's conv (same semantics as nn.Conv2d, stride=1, pad=1).
    ref = jax.lax.conv_general_dilated(
        x, weight, window_strides=(1, 1), padding=((1, 1), (1, 1)),
        dimension_numbers=("NCHW", "OIHW", "NCHW"),
    ) + bias.reshape(1, OC, 1, 1)
    assert out.shape == (B, OC, H, W)
    assert jnp.allclose(out, ref, atol=1e-4, rtol=1e-4)

    print("KERNEL_OK")
</pallas_src>

<mosaic_0001>
module attributes {stable_mosaic.version = 11 : i64} {
  func.func @_conv_matmul_kernel(%arg0: i32, %arg1: i32, %arg2: memref<1x28x256xf32, #tpu.memory_space<vmem>>, %arg3: memref<64x28xf32, #tpu.memory_space<vmem>>, %arg4: memref<1x64x256xf32, #tpu.memory_space<vmem>>) attributes {dimension_semantics = [#tpu.dimension_semantics<parallel>, #tpu.dimension_semantics<parallel>], iteration_bounds = array<i64: 2, 1>, scalar_prefetch = 0 : i64, scratch_operands = 0 : i64, tpu.core_type = #tpu.core_type<tc>, window_params = [{transform_indices = @transform_0, window_bounds = array<i64: 1, 28, 256>}, {pipeline_mode = #tpu.pipeline_mode<synchronous>, transform_indices = @transform_1, window_bounds = array<i64: 64, 28>}, {transform_indices = @transform_2, window_bounds = array<i64: 1, 64, 256>}]} {
    %c0 = arith.constant 0 : index
    %c0_0 = arith.constant 0 : index
    %0 = vector.load %arg3[%c0, %c0_0] : memref<64x28xf32, #tpu.memory_space<vmem>>, vector<64x28xf32>
    %c0_1 = arith.constant 0 : index
    %c0_2 = arith.constant 0 : index
    %c0_3 = arith.constant 0 : index
    %1 = vector.load %arg2[%c0_1, %c0_2, %c0_3] : memref<1x28x256xf32, #tpu.memory_space<vmem>>, vector<1x28x256xf32>
    %2 = vector.shape_cast %1 : vector<1x28x256xf32> to vector<28x256xf32>
    %cst = arith.constant dense<0.000000e+00> : vector<64x256xf32>
    %3 = tpu.matmul %0, %2, %cst {dimension_numbers = #tpu.dot_dimension_numbers<[1], [0], [0], [1], [0, 0, 1, 1], [], []>} : vector<64x28xf32>, vector<28x256xf32>, vector<64x256xf32> -> vector<64x256xf32>
    %c0_4 = arith.constant 0 : index
    %c0_5 = arith.constant 0 : index
    %c0_6 = arith.constant 0 : index
    %4 = vector.load %arg4[%c0_4, %c0_5, %c0_6] : memref<1x64x256xf32, #tpu.memory_space<vmem>>, vector<1x64x256xf32>
    %5 = vector.shape_cast %4 : vector<1x64x256xf32> to vector<64x256xf32>
    %6 = vector.shape_cast %3 : vector<64x256xf32> to vector<1x64x256xf32>
    tpu.vector_store %arg4[%c0_4, %c0_5, %c0_6], %6 {strides = array<i32>} : memref<1x64x256xf32, #tpu.memory_space<vmem>>, vector<1x64x256xf32>,
    return
  }
  func.func @transform_0(%arg0: i32, %arg1: i32) -> (i32, i32, i32) {
    %c0_i32 = arith.constant 0 : i32
    %c0_i32_0 = arith.constant 0 : i32
    return %arg0, %c0_i32, %arg1 : i32, i32, i32
  }
  func.func @transform_1(%arg0: i32, %arg1: i32) -> (i32, i32) {
    %c0_i32 = arith.constant 0 : i32
    %c0_i32_0 = arith.constant 0 : i32
    %c0_i32_1 = arith.constant 0 : i32
    return %c0_i32, %c0_i32_0 : i32, i32
  }
  func.func @transform_2(%arg0: i32, %arg1: i32) -> (i32, i32, i32) {
    %c0_i32 = arith.constant 0 : i32
    %c0_i32_0 = arith.constant 0 : i32
    return %arg0, %c0_i32, %arg1 : i32, i32, i32
  }
}

</mosaic_0001>

<bundles_post_ra>
// kernel: tpu_custom_call.1
= control target key start
LH: loop header
LB: loop body
LE: loop exit
PB: predicated region body
PF: predicated region fallthrough
CT: control target
= control target key end

     0   :  { %7 = vsyncpa [#allocation3], 0  ;;  %s813_s0 = inlined_call_operand.vmem [shape: f32[2,28,256], index: 0, kind: input, shape index: {}]   ;;  %s814_s1 = inlined_call_operand.vmem [shape: f32[64,28], index: 1, kind: input, shape index: {}]   ;;  %s815_s2 = inlined_call_operand.hbm [shape: f32[2,64,256], index: 2, kind: output, shape index: {}]  }
   0x1   :  { %9 = vsyncpa [#allocation3 + $0x1], 0  ;;  %s643_s9 = smov 0   ;;  %s645_s10 = smov 0  }
   0x2   :  { %s647_s11 = smov 0   ;;  %s649_s12 = smov 0  }
   0x3   :  { %s651_s13 = smov 0   ;;  %s653_s14 = smov 0  }
   0x4 LB: > { %s445_s15 = sadd.s32 4294967295, %s621_s14   ;;  %s446_s16 = sadd.s32 4294967294, %s621_s14   ;;  %s621_s14 = sphi %s653_s14, %s15_s14   ;;  %s617_s13 = sphi %s651_s13, %s822_s13   ;;  %s613_s12 = sphi %s649_s12, %s821_s12   ;;  %s609_s11 = sphi %s647_s11, %s820_s11   ;;  %s605_s10 = sphi %s645_s10, %s819_s10   ;;  %s601_s9 = sphi %s643_s9, %s818_s9  }
   0x5   : > { %s27_s17 = sadd.s32 1, %s617_s13  ;;  %s85_s18 = sadd.s32 1, %s609_s11 }
   0x6   : > { %p29_p0 = scmp.ge.s32.totalorder %s27_s17, 2  ;;  %p95_p1 = scmp.ne.s32.totalorder %s609_s11, %s605_s10 }
   0x7   : > { %p96_p2 = scmp.eq.s32.totalorder %s445_s15, 1  ;;  %p101_p3 = scmp.ne.s32.totalorder %s605_s10, %s601_s9 }
   0x8   : > { %s824_s17 = smov (%p29_p0, %s27_s17), 0  ;;  %p102_p5 = scmp.eq.s32.totalorder %s446_s16, 1 }
   0x9   : > { %p683_p4 = por %p96_p2, %p95_p1  ;;  %s80_s20 = ssub.s32 %s617_s13, %s824_s17 }
   0xa   : > { %p449_p6 = scmp.ge.s32.totalorder %s621_s14, 1  ;;  %p83_p7 = scmp.eq.s32.totalorder %s80_s20, 0 }
   0xb   : > { %p690_p8 = por %p102_p5, %p101_p3  ;;  %p136_p9 = scmp.lt.s32.totalorder %s621_s14, 3 }
   0xc   : > { %s696_s22 = scalar_select %p83_p7, %s609_s11, %s85_s18  }
   0xd   : > { %p137_p10 = pnand %p449_p6, %p136_p9 }
   0xe   : > { %p163_p11 = scmp.lt.s32.totalorder (!%p137_p10), %s613_s12, 1  ;;  %v623_v0 = vmov (!%p137_p10), 0.0   ;;  %vm214_vm0 = vcmask (!%p137_p10), 1043456   ;;  %vm624_vm1 = vmmov (!%p137_p10), 1   ;;  %v173_v13 = vld [vmem:[%s814_s1] sm:$0xff] (!%p137_p10)  ;;  %vm189_vm3 = vcmask (!%p137_p10), 228352  }
   0xf   : > { %140 = sbr.rel (%p137_p10) target bundleno = 277 (0x115), region = 28  ;;  %285 = vmatprep.mubr.f32.mxu0 (!%p137_p10), %v623_v0  ;;  %309 = vmatprep.mubr.f32.mxu1 (!%p137_p10), %v623_v0  ;;  %vm475_vm2 = vmpackc.low (!%p137_p10), %vm214_vm0, %vm624_vm1  ;;  %v177_v14 = vld [vmem:[%s814_s1 + $0x20] sm:$0xff] (!%p137_p10)  ;;  %v174_v15 = vld [vmem:[%s814_s1 + $0x8] sm:$0xff] (!%p137_p10)  ;;  %s159_s26 = sand.u32 (!%p137_p10), 1, %s605_s10  }
  0x10   : > { %v178_v16 = vld [vmem:[%s814_s1 + $0x28] sm:$0xff] (!%p137_p10)  ;;  %v175_v17 = vld [vmem:[%s814_s1 + $0x10] sm:$0xff] (!%p137_p10)  ;;  %v176_v19 = vld [vmem:[%s814_s1 + $0x18] sm:$0xff] (!%p137_p10)  ;;  %s469_s29 = sshll.u32 (!%p137_p10), %s613_s12, 11  ;;  %s625_s7 = smov (!%p137_p10), [#allocation2]  }
  0x11   : > { %v179_v18 = vld [vmem:[%s814_s1 + $0x30] sm:$0xff] (!%p137_p10)  ;;  %v180_v20 = vld [vmem:[%s814_s1 + $0x38] sm:$0xff] (!%p137_p10)  ;;  %s757_s5 = scalar_lea.hbm (!%p137_p10), %s815_s2, %s469_s29  ;;  %s547_s8 = sshll.u32 (!%p137_p10), %s625_s7, 4  ;;  %s548_s8 = int_to_ptr.vmem [resolvable:$false] %s547_s8 }
  0x12   : > { %s549_s15 = scalar_lea.vmem (!%p137_p10), %s548_s8, 4096 }
  0x16   : > { %s164_s23 = scalar_select %p163_p11, %s613_s12, 1 }
  0x17   : > { %s767_s12 = scalar_lea.sflag [#allocation3], %s159_s26 }
  0x18   : > { %s468_s24 = sshll.u32 %s164_s23, 6 }
  0x19   : > { %s170_s27 = scalar_lea.vmem %s813_s0, %s468_s24 }
  0x1a   : > { %v182_v1 = vld [vmem:[%s170_s27 + $0x8] sm:$0xff]  ;;  %v184_v2 = vld [vmem:[%s170_s27 + $0x18] sm:$0xff]  ;;  %v181_v3 = vld [vmem:[%s170_s27] sm:$0xff] }
  0x1b   : > { %v470_v4 = vpack.c.bf16 %v184_v2, %v182_v1  ;;  %v183_v5 = vld [vmem:[%s170_s27 + $0x10] sm:$0xff]  ;;  %v186_v6 = vld [vmem:[%s170_s27 + $0x28] sm:$0xff]  ;;  %v188_v7 = vld [vmem:[%s170_s27 + $0x38] sm:$0xf] }
  0x1c   : > { %v472_v8 = vpack.c.bf16 %v183_v5, %v181_v3  ;;  %v474_v9 = vpack.c.bf16 %v188_v7, %v186_v6  ;;  %v185_v10 = vld [vmem:[%s170_s27 + $0x20] sm:$0xff]  ;;  %v187_v11 = vld [vmem:[%s170_s27 + $0x30] sm:$0xf]  ;;  %s450_s27 = sshll.u32 %s159_s26, 7 }
  0x1d   : > { %471 = vmatprep.subr.bf16.mxu0 %v470_v4  ;;  %480 = vmatprep.subr.bf16.mxu1 %v470_v4  ;;  %v477_v12 = vpack.c.bf16 %v187_v11, %v185_v10  ;;  %s738_s28 = scalar_lea.vmem [#allocation2], %s450_s27 }
  0x1e   : > { %473 = vmatpush1.bf16.msra.mxu0 %v472_v8  ;;  %482 = vmatpush1.bf16.msra.mxu1 %v472_v8  ;;  %s366_s30 = sshll.u32 %s738_s28, 4  ;;  %s759_s30 = int_to_ptr.vmem [resolvable:$true] %s366_s30 }
  0x1f   : > { %476 = vmatprep.subr.msk.bf16.mxu0 %vm475_vm2, %v474_v9  ;;  %481 = vmatprep.subr.msk.bf16.mxu1 %vm475_vm2, %v474_v9  ;;  %s543_s6 = scalar_lea.vmem %s759_s30, 2048  ;;  %p550_p1 = scmp.lt.s32.totalorder %s759_s30, %s548_s8 }
  0x20   : > { %p544_p12 = scmp.ne.s32.totalorder %s759_s30, %s543_s6  ;;  %p551_p2 = scmp.lt.s32.totalorder %s549_s15, %s543_s6 }
  0x22   : > { %479 = vmatpush1.bf16.msk.msra.mxu0 %vm475_vm2, %v477_v12  ;;  %483 = vmatpush1.bf16.msk.msra.mxu1 %vm475_vm2, %v477_v12  ;;  %p545_p13 = pnand %p544_p12, %p683_p4  ;;  %p552_p3 = por %p551_p2, %p550_p1 }
  0x24   : > { %p546_p0 = pneg %p545_p13 }
  0x25   : > { %455 = vmatmul.mubr.msk.f32.vlgmr.msra.gmra.mrb[0].mxu0 %vm189_vm3, %v173_v13  ;;  %459 = vmatmul.mubr.msk.f32.vlgmr.msra.gmra.mrb[0].mxu1 %vm189_vm3, %v177_v14 }
  0x26   : > { %291 = vmatprep.mubr.f32.mxu0 %v623_v0  ;;  %315 = vmatprep.mubr.f32.mxu1 %v623_v0  ;;  %p553_p5 = pnand %p552_p3, %p546_p0 }
  0x29   : > { %456 = vmatmul.mubr.msk.f32.gmra.mrb[2].mxu0 %vm189_vm3, %v174_v15  ;;  %460 = vmatmul.mubr.msk.f32.gmra.mrb[2].mxu1 %vm189_vm3, %v178_v16 }
  0x2a   : > { %297 = vmatprep.mubr.f32.mxu0 %v623_v0  ;;  %321 = vmatprep.mubr.f32.mxu1 %v623_v0 }
  0x2d   : > { %457 = vmatmul.mubr.msk.f32.gmra.mrb[4].mxu0 %vm189_vm3, %v175_v17  ;;  %461 = vmatmul.mubr.msk.f32.gmra.mrb[4].mxu1 %vm189_vm3, %v179_v18 }
  0x2e   : > { %303 = vmatprep.mubr.f32.mxu0 %v623_v0  ;;  %327 = vmatprep.mubr.f32.mxu1 %v623_v0 }
  0x31   : > { %458 = vmatmul.mubr.msk.f32.gmra.mrb[6].mxu0 %vm189_vm3, %v176_v19  ;;  %462 = vmatmul.mubr.msk.f32.gmra.mrb[6].mxu1 %vm189_vm3, %v180_v20 }
  0xf8   : > { %v287_v21 = vpop.f32.mrb[0].mxu0  ;;  %v311_v22 = vpop.f32.mrb[0].mxu1 }
  0xf9   : > { %334 = vst [vmem:[%s738_s28] sm:$0xff] %v287_v21  ;;  %342 = vst [vmem:[%s738_s28 + $0x40] sm:$0xff] %v311_v22  ;;  %v289_v23 = vpop.f32.mrb[1].mxu0  ;;  %v313_v24 = vpop.f32.mrb[1].mxu1 }
  0xfa   : > { %335 = vst [vmem:[%s738_s28 + $0x8] sm:$0xff] %v289_v23  ;;  %343 = vst [vmem:[%s738_s28 + $0x48] sm:$0xff] %v313_v24 }
  0xfc   : > { %v293_v25 = vpop.f32.mrb[2].mxu0  ;;  %v317_v26 = vpop.f32.mrb[2].mxu1 }
  0xfd   : > { %336 = vst [vmem:[%s738_s28 + $0x10] sm:$0xff] %v293_v25  ;;  %344 = vst [vmem:[%s738_s28 + $0x50] sm:$0xff] %v317_v26  ;;  %v295_v27 = vpop.f32.mrb[3].mxu0  ;;  %v319_v28 = vpop.f32.mrb[3].mxu1 }
  0xfe   : > { %337 = vst [vmem:[%s738_s28 + $0x18] sm:$0xff] %v295_v27  ;;  %345 = vst [vmem:[%s738_s28 + $0x58] sm:$0xff] %v319_v28 }
 0x100   : > { %v299_v29 = vpop.f32.mrb[4].mxu0  ;;  %v323_v30 = vpop.f32.mrb[4].mxu1 }
 0x101   : > { %338 = vst [vmem:[%s738_s28 + $0x20] sm:$0xff] %v299_v29  ;;  %346 = vst [vmem:[%s738_s28 + $0x60] sm:$0xff] %v323_v30  ;;  %v301_v31 = vpop.f32.mrb[5].mxu0  ;;  %v325_v32 = vpop.f32.mrb[5].mxu1 }
 0x102   : > { %339 = vst [vmem:[%s738_s28 + $0x28] sm:$0xff] %v301_v31  ;;  %347 = vst [vmem:[%s738_s28 + $0x68] sm:$0xff] %v325_v32 }
 0x104   : > { %v305_v33 = vpop.f32.mrb[6].mxu0  ;;  %v329_v34 = vpop.f32.mrb[6].mxu1 }
 0x105   : > { %340 = vst [vmem:[%s738_s28 + $0x30] sm:$0xff] %v305_v33  ;;  %348 = vst [vmem:[%s738_s28 + $0x70] sm:$0xff] %v329_v34  ;;  %v307_v35 = vpop.f32.mrb[7].mxu0  ;;  %v331_v36 = vpop.f32.mrb[7].mxu1 }
 0x106   : > { %341 = vst [vmem:[%s738_s28 + $0x38] sm:$0xff] %v307_v35  ;;  %349 = vst [vmem:[%s738_s28 + $0x78] sm:$0xff] %v331_v36 }
 0x107   : > { %556 = shalt.err (!%p553_p5)
}
 0x108   : > { %s557_s16 = scalar_lea.hbm %s757_s5, 2048  ;;  %s561_s23 = scalar_lea.hbm %s815_s2, 4096 }
 0x109   : > { %p558_p6 = scmp.ne.s32.totalorder %s757_s5, %s557_s16  ;;  %p562_p10 = scmp.lt.u32.totalorder %s757_s5, %s815_s2 }
 0x10a   : > { %p563_p11 = scmp.lt.u32.totalorder %s561_s23, %s557_s16  ;;  %p565_p13 = scmp.lt.u32.totalorder %s557_s16, %s757_s5 }
 0x10b   : > { %p559_p7 = pnand %p558_p6, %p683_p4 }
 0x10c   : > { %p564_p12 = por %p563_p11, %p562_p10 }
 0x10d   : > { %p560_p9 = pneg %p559_p7 }
 0x10e   : > { %p566_p0 = por %p565_p13, %p564_p12 }
 0x110   : > { %p567_p1 = pnand %p566_p0, %p560_p9 }
 0x112   : > { %570 = shalt.err (!%p567_p1)
}
 0x113   : > { %s626_s26 = smov 256   ;;  %s627_s27 = smov 16  }
 0x114   : > { %484 = dma.vmem_to_hbm [thread:$0]  (%p683_p4), %s759_s30, 2048, %s757_s5, %s767_s12, %s626_s26, %s626_s26, %s627_s27  }
 0x115 PF: > { %p490_p2 = scmp.ge.s32.totalorder %s621_s14, 2  ;;  %s381_s28 = sand.u32 1, %s601_s9  }
 0x116   : > { %s382_s29 = scalar_lea.sflag [#allocation3], %s381_s28 }
 0x117   : > { %p487_p3 = pnand %p490_p2, %p690_p8 }
 0x119   : > { %596 = dma.done.wait (!%p487_p3), %s382_s29, 2048  }
 0x11a   : > { %598 = vsyncadd (!%p487_p3), %s382_s29, 4294965248  ;;  %s15_s14 = sadd.s32 1, %s621_s14   ;;  %s818_s9 = smov %s605_s10 }
 0x11b   : > { %p12_p5 = scmp.ge.s32.totalorder %s15_s14, 4   ;;  %s819_s10 = smov %s609_s11 }
 0x11c   : > { %s820_s11 = smov %s696_s22  ;;  %s821_s12 = smov %s617_s13 }
 0x11d   : > { %s822_s13 = smov %s824_s17  ;;  %14 = sbr.rel (!%p12_p5) target bundleno = 4 (0x4), region = 63 }
 0x124   :  { %387 = vsyncpa [#allocation3], 1 }
 0x125   :  { %389 = vsyncpa [#allocation3 + $0x1], 1 }

</bundles_post_ra>
